<compile_context>
chip_gen: v7x
topology: tpu7x:2x2x1
jax: 0.10.0
libtpu: 0.0.40
codegen_flags: <defaults>
</compile_context>

<pallas_src>
import jax
import jax.numpy as jnp
from jax.experimental import pallas as pl
from jax.experimental.pallas import tpu as pltpu


_TARGET_BLOCK_ELEMS = 1 << 20                  # ~4 MiB f32 / 2 MiB bf16 per tile
_LANE_WIDTHS = (1024, 512, 256, 128)           # preferred lane-dense widths


def _hsigmoid_kernel(x_ref, o_ref):
    # x_ref / o_ref: (block_rows, width) VMEM tiles.
    x = x_ref[...].astype(jnp.float32)
    y = jnp.clip(x + 3.0, 0.0, 6.0) * (1.0 / 6.0)     # relu6(x + 3) / 6
    o_ref[...] = y.astype(o_ref.dtype)


def _sublane_multiple(dtype):
    # 8 rows per vreg sublane group for 4-byte dtypes, 16 for bf16, 32 for int8.
    itemsize = jnp.dtype(dtype).itemsize
    return max(8, 32 // max(1, itemsize))


def _round_up(a, m):
    return ((a + m - 1) // m) * m


def _pick_2d(shape, n):
    """Zero-copy (rows, width) factorization of an n-element array."""
    for w in _LANE_WIDTHS:
        if n % w == 0:
            return n // w, w                    # lane-dense -> unmasked stores
    # Ragged element count: collapse to (prod(shape[:-1]), shape[-1]).
    # No pad, no copy; masked lane stores only on these (rare) shapes.
    if len(shape) >= 2 and shape[-1] > 0:
        return n // shape[-1], shape[-1]
    return 1, n


@jax.jit
def hsigmoid(x):
    """Elementwise hard sigmoid: relu6(x + 3) / 6.  Any shape, f32 or bf16."""
    orig_shape = x.shape
    dtype = x.dtype
    n = x.size
    itemsize = jnp.dtype(dtype).itemsize
    sub = _sublane_multiple(dtype)

    rows, width = _pick_2d(orig_shape, n)
    padded = False
    if width * itemsize * sub > 8 * 2**20:
        # Pathological guard: ragged total AND a single row too wide to tile
        # zero-copy in VMEM.  Pay one pad + slice copy (never hit by normal
        # NCHW activation shapes).
        width = 512
        rows = pl.cdiv(n, width)
        x2 = jnp.pad(x.reshape(-1), (0, rows * width - n)).reshape(rows, width)
        padded = True
    else:
        x2 = x.reshape(rows, width)             # free reshape, no data movement

    # Row-block size: big tiles for DMA efficiency, but >= 2 grid steps when
    # the whole array would otherwise fit in a single block (v7x dual-TC).
    if rows <= sub:
        brows = rows                            # single full-extent block
    else:
        max_rows = max(sub, (_TARGET_BLOCK_ELEMS // width) // sub * sub)
        brows = min(max_rows, _round_up(rows, sub))
        if brows >= rows:
            brows = max(sub, _round_up(pl.cdiv(rows, 2), sub))
    grid = (pl.cdiv(rows, brows),)

    # Right-sized VMEM: double-buffered input + output tiles plus slack.
    block_bytes = brows * width * itemsize
    vmem_limit = int(min(56 * 2**20, max(16 * 2**20, 4 * block_bytes + 4 * 2**20)))

    out2 = pl.pallas_call(
        _hsigmoid_kernel,
        out_shape=jax.ShapeDtypeStruct((rows, width), dtype),
        grid_spec=pltpu.PrefetchScalarGridSpec(
            num_scalar_prefetch=0,
            grid=grid,
            in_specs=[pl.BlockSpec((brows, width), lambda i: (i, 0))],
            out_specs=pl.BlockSpec((brows, width), lambda i: (i, 0)),
        ),
        compiler_params=pltpu.CompilerParams(
            dimension_semantics=("parallel",),
            vmem_limit_bytes=vmem_limit,
        ),
    )(x2)

    if padded:
        return out2.reshape(-1)[:n].reshape(orig_shape)
    return out2.reshape(orig_shape)


def _reference(x):
    return jnp.clip(x.astype(jnp.float32) + 3.0, 0.0, 6.0) / 6.0


if __name__ == "__main__":
    key = jax.random.PRNGKey(0)
    k0, k1 = jax.random.split(key)

    # Small shape consistent with the module's usage (NCHW activations).
    N, C, H, W = 2, 4, 16, 16
    x = jax.random.normal(k0, (N, C, H, W), dtype=jnp.float32) * 3.0

    out = jax.block_until_ready(hsigmoid(x))
    ref = _reference(x)
    assert out.shape == x.shape and out.dtype == x.dtype
    assert jnp.allclose(out, ref, atol=1e-6, rtol=1e-6), "f32 mismatch vs reference"

    # Ragged element count (not a multiple of 128): zero-copy fallback layout.
    x_odd = jax.random.normal(k1, (3, 5, 7, 7), dtype=jnp.float32) * 3.0
    out_odd = jax.block_until_ready(hsigmoid(x_odd))
    assert jnp.allclose(out_odd, _reference(x_odd), atol=1e-6, rtol=1e-6), \
        "odd-shape mismatch vs reference"

    # bf16 I/O path (halves HBM bytes; math still f32 in-kernel).
    x_bf16 = x.astype(jnp.bfloat16)
    out_bf16 = jax.block_until_ready(hsigmoid(x_bf16))
    assert out_bf16.dtype == jnp.bfloat16
    assert jnp.allclose(out_bf16.astype(jnp.float32), _reference(x_bf16),
                        atol=1e-2, rtol=1e-2), "bf16 mismatch vs reference"

    # Larger shape exercising the multi-step grid (both TCs busy on v7x).
    x_big = jax.random.normal(k0, (8, 32, 32, 32), dtype=jnp.float32)
    out_big = jax.block_until_ready(hsigmoid(x_big))
    assert jnp.allclose(out_big, _reference(x_big), atol=1e-6, rtol=1e-6), \
        "multi-block mismatch vs reference"

    print("KERNEL_OK")
</pallas_src>

<mosaic_0001>
module attributes {stable_mosaic.version = 11 : i64} {
  func.func @_hsigmoid_kernel(%arg0: i32, %arg1: memref<2x1024xf32, #tpu.memory_space<vmem>>, %arg2: memref<2x1024xf32, #tpu.memory_space<vmem>>) attributes {dimension_semantics = [#tpu.dimension_semantics<parallel>], iteration_bounds = array<i64: 1>, scalar_prefetch = 0 : i64, scratch_operands = 0 : i64, tpu.core_type = #tpu.core_type<tc>, window_params = [{transform_indices = @transform_0, window_bounds = array<i64: 2, 1024>}, {transform_indices = @transform_1, window_bounds = array<i64: 2, 1024>}]} {
    %c0 = arith.constant 0 : index
    %c0_0 = arith.constant 0 : index
    %0 = vector.load %arg1[%c0, %c0_0] : memref<2x1024xf32, #tpu.memory_space<vmem>>, vector<2x1024xf32>
    %cst = arith.constant 3.000000e+00 : f32
    %1 = vector.broadcast %cst : f32 to vector<2x1024xf32>
    %2 = arith.addf %0, %1 : vector<2x1024xf32>
    %cst_1 = arith.constant 0.000000e+00 : f32
    %cst_2 = arith.constant 6.000000e+00 : f32
    %3 = vector.broadcast %cst_1 : f32 to vector<2x1024xf32>
    %4 = arith.maximumf %3, %2 : vector<2x1024xf32>
    %5 = vector.broadcast %cst_2 : f32 to vector<2x1024xf32>
    %6 = arith.minimumf %5, %4 : vector<2x1024xf32>
    %cst_3 = arith.constant 0.166666672 : f32
    %7 = vector.broadcast %cst_3 : f32 to vector<2x1024xf32>
    %8 = arith.mulf %6, %7 : vector<2x1024xf32>
    %c0_4 = arith.constant 0 : index
    %c0_5 = arith.constant 0 : index
    %9 = vector.load %arg2[%c0_4, %c0_5] : memref<2x1024xf32, #tpu.memory_space<vmem>>, vector<2x1024xf32>
    tpu.vector_store %arg2[%c0_4, %c0_5], %8 {strides = array<i32>} : memref<2x1024xf32, #tpu.memory_space<vmem>>, vector<2x1024xf32>,
    return
  }
  func.func @transform_0(%arg0: i32) -> (i32, i32) {
    %c0_i32 = arith.constant 0 : i32
    %c0_i32_0 = arith.constant 0 : i32
    return %arg0, %c0_i32 : i32, i32
  }
  func.func @transform_1(%arg0: i32) -> (i32, i32) {
    %c0_i32 = arith.constant 0 : i32
    %c0_i32_0 = arith.constant 0 : i32
    return %arg0, %c0_i32 : i32, i32
  }
}

</mosaic_0001>

<bundles_post_ra>
// kernel: hsigmoid.1
= control target key start
LH: loop header
LB: loop body
LE: loop exit
PB: predicated region body
PF: predicated region fallthrough
CT: control target
= control target key end

     0   :  { %s46_s0 = inlined_call_operand.vmem [shape: f32[2,1024], index: 0, kind: input, shape index: {}]   ;;  %s47_s1 = inlined_call_operand.vmem [shape: f32[2,1024], index: 1, kind: output, shape index: {}]  }
   0x1   :  { %v8_v0 = vld [vmem:[%s46_s0] sm:$0xff]  ;;  %v9_v1 = vld [vmem:[%s46_s0 + $0x8] sm:$0xff] }
   0x2   :  { %v10_v2 = vadd.f32 3.0, %v8_v0  ;;  %v11_v3 = vadd.f32 3.0, %v9_v1 }
   0x4   :  { %v12_v4 = vmax.f32 %v10_v2, 0.0  ;;  %v13_v5 = vmax.f32 %v11_v3, 0.0 }
   0x6   :  { %v14_v6 = vmin.f32 %v12_v4, 6.0  ;;  %v15_v7 = vmin.f32 %v13_v5, 6.0 }
   0x8   :  { %v16_v8 = vmul.f32 0.16666667, %v14_v6  ;;  %v17_v9 = vmul.f32 0.16666667, %v15_v7 }
   0xa   :  { %18 = vst [vmem:[%s47_s1] sm:$0xff] %v16_v8  ;;  %19 = vst [vmem:[%s47_s1 + $0x8] sm:$0xff] %v17_v9 }

</bundles_post_ra>
